<compile_context>
chip_gen: v5e
topology: v5e:2x2
jax: 0.10.0
libtpu: 0.0.40
codegen_flags: <defaults>
</compile_context>

<pallas_src>
import jax
import jax.numpy as jnp
from jax.experimental import pallas as pl
from jax.experimental.pallas import tpu as pltpu


def _round_up(n: int, m: int) -> int:
    return ((n + m - 1) // m) * m


def value_net_kernel(x_ref, w1_ref, b1_ref, w2_ref, b2_ref, w3_ref, b3_ref, o_ref):
    # Layer 1: bf16 MXU matmul, f32 accumulate, f32 bias + sigmoid (EUP).
    xb = x_ref[...].astype(jnp.bfloat16)
    h = jnp.dot(xb, w1_ref[...], preferred_element_type=jnp.float32) + b1_ref[...]
    h = jax.nn.sigmoid(h)
    # Layer 2: same.
    h = jnp.dot(h.astype(jnp.bfloat16), w2_ref[...],
                preferred_element_type=jnp.float32) + b2_ref[...]
    h = jax.nn.sigmoid(h)
    # Output head (hidden -> 1): VPU multiply + lane reduction (avoids an MXU
    # matmul with output width 1).  b3 is a scalar read from SMEM.
    v = jnp.sum(h * w3_ref[...], axis=-1, keepdims=True) + b3_ref[0]
    o_ref[...] = v.astype(o_ref.dtype)


def value_network_ppo(x, params, *, block_b: int = 512, interpret: bool = False):
    """x: (B, input_size) float32. Returns (B,) float32 (squeeze(-1) applied)."""
    w1, b1, w2, b2, w3, b3 = params
    B, din = x.shape
    H = w1.shape[1]

    # Pad feature dims to full 128-lane vregs; pick a batch tile (multiple of 8).
    din_p = _round_up(din, 128)
    h_p = _round_up(H, 128)
    tb = min(block_b, _round_up(B, 8))
    b_p = _round_up(B, tb)
    grid = (b_p // tb,)

    x_p = jnp.pad(x.astype(jnp.float32), ((0, b_p - B), (0, din_p - din)))
    w1_p = jnp.pad(w1, ((0, din_p - din), (0, h_p - H))).astype(jnp.bfloat16)
    w2_p = jnp.pad(w2, ((0, h_p - H), (0, h_p - H))).astype(jnp.bfloat16)
    b1_p = jnp.pad(b1.astype(jnp.float32).reshape(1, H), ((0, 0), (0, h_p - H)))
    b2_p = jnp.pad(b2.astype(jnp.float32).reshape(1, H), ((0, 0), (0, h_p - H)))
    w3_p = jnp.pad(w3.astype(jnp.float32).reshape(1, H), ((0, 0), (0, h_p - H)))
    b3_p = jnp.asarray(b3, jnp.float32).reshape(1)

    flops = 2 * b_p * (din_p * h_p + h_p * h_p + h_p)
    transcendentals = 2 * b_p * h_p  # one exp per sigmoid element
    bytes_accessed = (x_p.size * 4 + w1_p.size * 2 + w2_p.size * 2
                      + (b1_p.size + b2_p.size + w3_p.size + b3_p.size) * 4
                      + b_p * 4)

    out = pl.pallas_call(
        value_net_kernel,
        out_shape=jax.ShapeDtypeStruct((b_p, 1), jnp.float32),
        grid=grid,
        in_specs=[
            pl.BlockSpec((tb, din_p), lambda i: (i, 0)),    # x: batch-tiled, pipelined
            pl.BlockSpec((din_p, h_p), lambda i: (0, 0)),   # w1: VMEM-resident
            pl.BlockSpec((1, h_p), lambda i: (0, 0)),       # b1
            pl.BlockSpec((h_p, h_p), lambda i: (0, 0)),     # w2: VMEM-resident
            pl.BlockSpec((1, h_p), lambda i: (0, 0)),       # b2
            pl.BlockSpec((1, h_p), lambda i: (0, 0)),       # w3 row (VPU head)
            pl.BlockSpec(memory_space=pltpu.SMEM),          # b3 scalar in SMEM
        ],
        out_specs=pl.BlockSpec((tb, 1), lambda i: (i, 0)),
        compiler_params=pltpu.CompilerParams(
            dimension_semantics=("parallel",),              # independent batch tiles
        ),
        cost_estimate=pl.CostEstimate(
            flops=flops,
            transcendentals=transcendentals,
            bytes_accessed=bytes_accessed,
        ),
        interpret=interpret,
    )(x_p, w1_p, b1_p, w2_p, b2_p, w3_p, b3_p)

    return out[:B, 0]  # drop batch padding + squeeze(-1), matching value.squeeze(-1)


def init_params(key, input_size, hidden_size):
    """Deterministic synthetic parameters mirroring the nn.Linear layers
    (stored transposed as (in, out) so the kernel computes x @ W + b)."""
    k1, k2, k3, k4, k5, k6 = jax.random.split(key, 6)
    w1 = jax.random.normal(k1, (input_size, hidden_size), jnp.float32) * 0.1
    b1 = jax.random.normal(k2, (hidden_size,), jnp.float32) * 0.1
    w2 = jax.random.normal(k3, (hidden_size, hidden_size), jnp.float32) * 0.1
    b2 = jax.random.normal(k4, (hidden_size,), jnp.float32) * 0.1
    w3 = jax.random.normal(k5, (hidden_size,), jnp.float32) * 0.1
    b3 = jax.random.normal(k6, (), jnp.float32) * 0.1
    return (w1, b1, w2, b2, w3, b3)


def reference_forward(x, params):
    """Plain-JAX reference with the same bf16-weight / f32-accumulate math."""
    w1, b1, w2, b2, w3, b3 = params
    h = jax.nn.sigmoid(
        jnp.dot(x.astype(jnp.bfloat16), w1.astype(jnp.bfloat16),
                preferred_element_type=jnp.float32) + b1)
    h = jax.nn.sigmoid(
        jnp.dot(h.astype(jnp.bfloat16), w2.astype(jnp.bfloat16),
                preferred_element_type=jnp.float32) + b2)
    return jnp.sum(h * w3[None, :], axis=-1) + b3


if __name__ == "__main__":
    batch = 8
    input_size = 16
    hidden_size = 64  # module default; num_layers=2 -> two hidden Linears + head

    key = jax.random.PRNGKey(0)
    kx, kp = jax.random.split(key)
    x = jax.random.normal(kx, (batch, input_size), jnp.float32)
    params = init_params(kp, input_size, hidden_size)

    out = value_network_ppo(x, params)
    out = jax.block_until_ready(out)

    ref = reference_forward(x, params)
    assert out.shape == (batch,), out.shape
    assert jnp.allclose(out, ref, atol=1e-4, rtol=1e-4), (out, ref)

    print("KERNEL_OK")
</pallas_src>

<mosaic_0001>
module attributes {stable_mosaic.version = 11 : i64} {
  func.func @value_net_kernel(%arg0: i32, %arg1: memref<8x128xf32, #tpu.memory_space<vmem>>, %arg2: memref<128x128xbf16, #tpu.memory_space<vmem>>, %arg3: memref<1x128xf32, #tpu.memory_space<vmem>>, %arg4: memref<128x128xbf16, #tpu.memory_space<vmem>>, %arg5: memref<1x128xf32, #tpu.memory_space<vmem>>, %arg6: memref<1x128xf32, #tpu.memory_space<vmem>>, %arg7: memref<1xf32, #tpu.memory_space<smem>>, %arg8: memref<8x1xf32, #tpu.memory_space<vmem>>) attributes {dimension_semantics = [#tpu.dimension_semantics<parallel>], iteration_bounds = array<i64: 1>, scalar_prefetch = 0 : i64, scratch_operands = 0 : i64, tpu.core_type = #tpu.core_type<tc>, window_params = [{transform_indices = @transform_0, window_bounds = array<i64: 8, 128>}, {pipeline_mode = #tpu.pipeline_mode<synchronous>, transform_indices = @transform_1, window_bounds = array<i64: 128, 128>}, {pipeline_mode = #tpu.pipeline_mode<synchronous>, transform_indices = @transform_2, window_bounds = array<i64: 1, 128>}, {pipeline_mode = #tpu.pipeline_mode<synchronous>, transform_indices = @transform_3, window_bounds = array<i64: 128, 128>}, {pipeline_mode = #tpu.pipeline_mode<synchronous>, transform_indices = @transform_4, window_bounds = array<i64: 1, 128>}, {pipeline_mode = #tpu.pipeline_mode<synchronous>, transform_indices = @transform_5, window_bounds = array<i64: 1, 128>}, {transform_indices = @transform_6, window_bounds = array<i64: 1>}, {transform_indices = @transform_7, window_bounds = array<i64: 8, 1>}]} {
    %c0 = arith.constant 0 : index
    %c0_0 = arith.constant 0 : index
    %0 = vector.load %arg1[%c0, %c0_0] : memref<8x128xf32, #tpu.memory_space<vmem>>, vector<8x128xf32>
    %1 = arith.truncf %0 : vector<8x128xf32> to vector<8x128xbf16>
    %c0_1 = arith.constant 0 : index
    %c0_2 = arith.constant 0 : index
    %2 = vector.load %arg2[%c0_1, %c0_2] : memref<128x128xbf16, #tpu.memory_space<vmem>>, vector<128x128xbf16>
    %cst = arith.constant dense<0.000000e+00> : vector<8x128xf32>
    %3 = tpu.matmul %1, %2, %cst {dimension_numbers = #tpu.dot_dimension_numbers<[1], [0], [0], [1], [0, 0, 1, 1], [], []>} : vector<8x128xbf16>, vector<128x128xbf16>, vector<8x128xf32> -> vector<8x128xf32>
    %c0_3 = arith.constant 0 : index
    %c0_4 = arith.constant 0 : index
    %4 = vector.load %arg3[%c0_3, %c0_4] : memref<1x128xf32, #tpu.memory_space<vmem>>, vector<1x128xf32>
    %5 = vector.broadcast %4 : vector<1x128xf32> to vector<8x128xf32>
    %6 = arith.addf %3, %5 : vector<8x128xf32>
    %7 = arith.negf %6 : vector<8x128xf32>
    %8 = math.exp %7 : vector<8x128xf32>
    %cst_5 = arith.constant 1.000000e+00 : f32
    %9 = vector.broadcast %cst_5 : f32 to vector<8x128xf32>
    %10 = arith.addf %9, %8 : vector<8x128xf32>
    %11 = arith.divf %9, %10 : vector<8x128xf32>
    %12 = arith.truncf %11 : vector<8x128xf32> to vector<8x128xbf16>
    %c0_6 = arith.constant 0 : index
    %c0_7 = arith.constant 0 : index
    %13 = vector.load %arg4[%c0_6, %c0_7] : memref<128x128xbf16, #tpu.memory_space<vmem>>, vector<128x128xbf16>
    %cst_8 = arith.constant dense<0.000000e+00> : vector<8x128xf32>
    %14 = tpu.matmul %12, %13, %cst_8 {dimension_numbers = #tpu.dot_dimension_numbers<[1], [0], [0], [1], [0, 0, 1, 1], [], []>} : vector<8x128xbf16>, vector<128x128xbf16>, vector<8x128xf32> -> vector<8x128xf32>
    %c0_9 = arith.constant 0 : index
    %c0_10 = arith.constant 0 : index
    %15 = vector.load %arg5[%c0_9, %c0_10] : memref<1x128xf32, #tpu.memory_space<vmem>>, vector<1x128xf32>
    %16 = vector.broadcast %15 : vector<1x128xf32> to vector<8x128xf32>
    %17 = arith.addf %14, %16 : vector<8x128xf32>
    %18 = arith.negf %17 : vector<8x128xf32>
    %19 = math.exp %18 : vector<8x128xf32>
    %cst_11 = arith.constant 1.000000e+00 : f32
    %20 = vector.broadcast %cst_11 : f32 to vector<8x128xf32>
    %21 = arith.addf %20, %19 : vector<8x128xf32>
    %22 = arith.divf %20, %21 : vector<8x128xf32>
    %c0_12 = arith.constant 0 : index
    %c0_13 = arith.constant 0 : index
    %23 = vector.load %arg6[%c0_12, %c0_13] : memref<1x128xf32, #tpu.memory_space<vmem>>, vector<1x128xf32>
    %24 = vector.broadcast %23 : vector<1x128xf32> to vector<8x128xf32>
    %25 = arith.mulf %22, %24 : vector<8x128xf32>
    %cst_14 = arith.constant dense<0.000000e+00> : vector<8xf32>
    %26 = vector.multi_reduction <add>, %25, %cst_14 [1] : vector<8x128xf32> to vector<8xf32>
    %27 = vector.shape_cast %26 : vector<8xf32> to vector<8x1xf32>
    %c0_15 = arith.constant 0 : index
    %28 = memref.load %arg7[%c0_15] : memref<1xf32, #tpu.memory_space<smem>>
    %29 = vector.broadcast %28 : f32 to vector<8x1xf32>
    %30 = arith.addf %27, %29 : vector<8x1xf32>
    %c0_16 = arith.constant 0 : index
    %c0_17 = arith.constant 0 : index
    %31 = vector.load %arg8[%c0_16, %c0_17] : memref<8x1xf32, #tpu.memory_space<vmem>>, vector<8x1xf32>
    tpu.vector_store %arg8[%c0_16, %c0_17], %30 {strides = array<i32>} : memref<8x1xf32, #tpu.memory_space<vmem>>, vector<8x1xf32>,
    return
  }
  func.func @transform_0(%arg0: i32) -> (i32, i32) {
    %c0_i32 = arith.constant 0 : i32
    %c0_i32_0 = arith.constant 0 : i32
    return %arg0, %c0_i32 : i32, i32
  }
  func.func @transform_1(%arg0: i32) -> (i32, i32) {
    %c0_i32 = arith.constant 0 : i32
    %c0_i32_0 = arith.constant 0 : i32
    %c0_i32_1 = arith.constant 0 : i32
    return %c0_i32, %c0_i32_0 : i32, i32
  }
  func.func @transform_2(%arg0: i32) -> (i32, i32) {
    %c0_i32 = arith.constant 0 : i32
    %c0_i32_0 = arith.constant 0 : i32
    %c0_i32_1 = arith.constant 0 : i32
    return %c0_i32, %c0_i32_0 : i32, i32
  }
  func.func @transform_3(%arg0: i32) -> (i32, i32) {
    %c0_i32 = arith.constant 0 : i32
    %c0_i32_0 = arith.constant 0 : i32
    %c0_i32_1 = arith.constant 0 : i32
    return %c0_i32, %c0_i32_0 : i32, i32
  }
  func.func @transform_4(%arg0: i32) -> (i32, i32) {
    %c0_i32 = arith.constant 0 : i32
    %c0_i32_0 = arith.constant 0 : i32
    %c0_i32_1 = arith.constant 0 : i32
    return %c0_i32, %c0_i32_0 : i32, i32
  }
  func.func @transform_5(%arg0: i32) -> (i32, i32) {
    %c0_i32 = arith.constant 0 : i32
    %c0_i32_0 = arith.constant 0 : i32
    %c0_i32_1 = arith.constant 0 : i32
    return %c0_i32, %c0_i32_0 : i32, i32
  }
  func.func @transform_6(%arg0: i32) -> i32 {
    %c0_i32 = arith.constant 0 : i32
    %c0_i32_0 = arith.constant 0 : i32
    return %c0_i32 : i32
  }
  func.func @transform_7(%arg0: i32) -> (i32, i32) {
    %c0_i32 = arith.constant 0 : i32
    %c0_i32_0 = arith.constant 0 : i32
    return %arg0, %c0_i32 : i32, i32
  }
}

</mosaic_0001>

<bundles_post_ra>
// kernel: tpu_custom_call.1
= control target key start
LH: loop header
LB: loop body
LE: loop exit
PB: predicated region body
PF: predicated region fallthrough
CT: control target
= control target key end

     0   :  { %13 = vsyncpa [#allocation4], 0  ;;  %s536_s0 = inlined_call_operand.hbm [shape: f32[8,128], index: 0, kind: input, shape index: {}]   ;;  %s537_s1 = inlined_call_operand.hbm [shape: bf16[128,128], index: 1, kind: input, shape index: {}]   ;;  %s538_s2 = inlined_call_operand.vmem [shape: f32[1,128], index: 2, kind: input, shape index: {}]   ;;  %s539_s3 = inlined_call_operand.hbm [shape: bf16[128,128], index: 3, kind: input, shape index: {}]   ;;  %s540_s4 = inlined_call_operand.vmem [shape: f32[1,128], index: 4, kind: input, shape index: {}]   ;;  %s541_s5 = inlined_call_operand.vmem [shape: f32[1,128], index: 5, kind: input, shape index: {}]   ;;  %s542_s6 = inlined_call_operand.<no memory space> [shape: f32[1], index: 6, kind: input, shape index: {}]   ;;  %s543_s7 = inlined_call_operand.vmem [shape: f32[8,1], index: 7, kind: output, shape index: {}]  }
   0x1   :  { %14 = vsyncpa [#allocation6], 0  ;;  %s30_s26 = sshll.u32 %s537_s1, 4  ;;  %s467_s27 = smov [#allocation5]   ;;  %s31_s26 = int_to_ptr.hbm [resolvable:$true] %s30_s26 }
   0x2   :  { %s32_s28 = sshll.u32 %s467_s27, 4  ;;  %s20_s8 = sshll.u32 %s536_s0, 4  ;;  %s33_s28 = int_to_ptr.vmem [resolvable:$true] %s32_s28  ;;  %s21_s8 = int_to_ptr.hbm [resolvable:$true] %s20_s8 }
   0x3   :  { %s468_s9 = smov 64   ;;  %s469_s10 = smov 4  }
   0x4   :  { %38 = dma.hbm_to_vmem [thread:$0]  %s31_s26, 1024, %s33_s28, [#allocation6], %s468_s9, %s468_s9, %s469_s10  }
   0x5   :  { %s470_s11 = smov [#allocation3]   ;;  %s45_s15 = sshll.u32 %s539_s3, 4  ;;  %s46_s15 = int_to_ptr.hbm [resolvable:$true] %s45_s15 }
   0x6   :  { %s22_s12 = sshll.u32 %s470_s11, 4  ;;  %s471_s1 = smov [#allocation7]   ;;  %s23_s12 = int_to_ptr.vmem [resolvable:$true] %s22_s12 }
   0x7   :  { %25 = dma.hbm_to_vmem [thread:$0]  %s21_s8, 128, %s23_s12, [#allocation4]  }
   0x8   :  { %s47_s16 = sshll.u32 %s471_s1, 4  ;;  %s48_s16 = int_to_ptr.vmem [resolvable:$true] %s47_s16 }
   0x9   :  { %53 = dma.hbm_to_vmem [thread:$0]  %s46_s15, 1024, %s48_s16, [#allocation6], %s468_s9, %s468_s9, %s469_s10  }
   0xa   :  { %463 = dma.done.wait [#allocation4], 128  }
   0xb   :  { %464 = vsyncadd [#allocation4], 4294967168 }
   0xc   :  { %465 = dma.done.wait [#allocation6], 2048  }
   0xd   :  { %466 = vsyncadd [#allocation6], 4294965248  ;;  %v366_v0 = vld [vmem:[#allocation5 + $0x38] sm:$0xff]  ;;  %v365_v1 = vld [vmem:[#allocation5 + $0x30] sm:$0xff]  ;;  %v283_v55 = vstv %s542_s6  ;;  %vm285_vm8 = vcmask 7168  }
   0xe   :  { %142 = vmatpush.bf16.msra.mxu0 %v366_v0  ;;  %v364_v2 = vld [vmem:[#allocation5 + $0x28] sm:$0xff]  ;;  %v363_v3 = vld [vmem:[#allocation5 + $0x20] sm:$0xff]  ;;  %v362_v4 = vld [vmem:[#allocation5 + $0x18] sm:$0xff] }
   0xf   :  { %v361_v5 = vld [vmem:[#allocation5 + $0x10] sm:$0xff]  ;;  %v360_v6 = vld [vmem:[#allocation5 + $0x8] sm:$0xff]  ;;  %v359_v7 = vld [vmem:[#allocation5] sm:$0xff] }
  0x10   :  { %v72_v8 = vld [vmem:[#allocation3] sm:$0xff]  ;;  %v373_v11 = vld [vmem:[#allocation7 + $0x30] sm:$0xff]  ;;  %v372_v12 = vld [vmem:[#allocation7 + $0x28] sm:$0xff] }
  0x11   :  { %v73_v9 = vpack.c.bf16 %v72_v8, %v72_v8  ;;  %v374_v10 = vld [vmem:[#allocation7 + $0x38] sm:$0xff]  ;;  %v371_v13 = vld [vmem:[#allocation7 + $0x20] sm:$0xff]  ;;  %v369_v15 = vld [vmem:[#allocation7 + $0x10] sm:$0xff] }
  0x12   :  { %143 = vmatpush.bf16.msra.mxu0 %v365_v1  ;;  %243 = vmatpush.bf16.msra.mxu1 %v374_v10  ;;  %v370_v14 = vld [vmem:[#allocation7 + $0x18] sm:$0xff]  ;;  %v368_v16 = vld [vmem:[#allocation7 + $0x8] sm:$0xff]  ;;  %v367_v17 = vld [vmem:[#allocation7] sm:$0xff] }
  0x13   :  { %v380_v18 = vld [vmem:[%s538_s2] ss:$0 sm:$0xff] }
  0x14   :  { %v381_v36 = vld [vmem:[%s540_s4] ss:$0 sm:$0xff] }
  0x15   :  { %v382_v50 = vld [vmem:[%s541_s5] ss:$0 sm:$0xff] }
  0x16   :  { %144 = vmatpush.bf16.msra.mxu0 %v364_v2  ;;  %244 = vmatpush.bf16.msra.mxu1 %v373_v11 }
  0x1a   :  { %145 = vmatpush.bf16.msra.mxu0 %v363_v3  ;;  %245 = vmatpush.bf16.msra.mxu1 %v372_v12 }
  0x1e   :  { %146 = vmatpush.bf16.msra.mxu0 %v362_v4  ;;  %246 = vmatpush.bf16.msra.mxu1 %v371_v13 }
  0x22   :  { %147 = vmatpush.bf16.msra.mxu0 %v361_v5  ;;  %247 = vmatpush.bf16.msra.mxu1 %v370_v14 }
  0x26   :  { %148 = vmatpush.bf16.msra.mxu0 %v360_v6  ;;  %248 = vmatpush.bf16.msra.mxu1 %v369_v15 }
  0x2a   :  { %149 = vmatpush.bf16.msra.mxu0 %v359_v7  ;;  %249 = vmatpush.bf16.msra.mxu1 %v368_v16 }
  0x2d   :  { %150 = vmatmul.bf16.vlgmr.msra.gmra.mxu0 %v73_v9 }
  0x2e   :  { %250 = vmatpush.bf16.msra.mxu1 %v367_v17 }
  0xaa   :  { %v151_v19 = vpop.f32.mrf.mxu0 }
  0xab   :  { %v152_v20 = vadd.f32 %v380_v18, %v151_v19 }
  0xad   :  { %v325_v21 = vmul.f32 -1.442695, %v152_v20 }
  0xaf   :  { %383 = vpow2.f32 %v325_v21 }
  0xb2   :  { %v153_v22 = vpop.f32.mrf.mxu0 }
  0xb5   :  { %v384_v23 = vpop.eup %383 }
  0xb6   :  { %v158_v24 = vadd.f32 1.0, %v384_v23 }
  0xb8   :  { %385 = vrcp.f32 %v158_v24  ;;  %v170_v28 = vand.u32 2147483648, %v158_v24  ;;  %v168_v30 = vand.u32 2147483647, %v158_v24  ;;  %vm164_vm1 = vweird.f32 %v158_v24 }
  0xba   :  { %v171_v32 = vor.u32 1.1754944e-38, %v170_v28  ;;  %vm169_vm3 = vcmp.eq.f32.partialorder %v168_v30, 8.507059e+37 }
  0xbe   :  { %v386_v25 = vpop.eup %385 }
  0xbf   :  { %v160_v26 = vmul.f32 %v386_v25, %v158_v24  ;;  %vm165_vm0 = vweird.f32 %v386_v25 }
  0xc0   :  { %vm166_vm2 = vmor %vm164_vm1, %vm165_vm0 }
  0xc1   :  { %v161_v27 = vsub.f32 1.0, %v160_v26 }
  0xc3   :  { %v162_v29 = vmul.f32 %v386_v25, %v161_v27 }
  0xc5   :  { %v163_v31 = vadd.f32 %v386_v25, %v162_v29 }
  0xc7   :  { %v167_v33 = vsel %vm166_vm2, %v386_v25, %v163_v31 }
  0xc8   :  { %v172_v34 = vsel %vm169_vm3, %v171_v32, %v167_v33 }
  0xc9   :  { %v174_v35 = vpack.c.bf16 %v172_v34, %v172_v34 }
  0xcb   :  { %251 = vmatmul.bf16.vlgmr.msra.gmra.mxu1 %v174_v35 }
 0x148   :  { %v252_v37 = vpop.f32.mrf.mxu1 }
 0x149   :  { %v253_v38 = vadd.f32 %v381_v36, %v252_v37 }
 0x14b   :  { %v358_v39 = vmul.f32 -1.442695, %v253_v38 }
 0x14d   :  { %387 = vpow2.f32 %v358_v39 }
 0x150   :  { %v254_v40 = vpop.f32.mrf.mxu1 }
 0x153   :  { %v388_v41 = vpop.eup %387 }
 0x154   :  { %v259_v42 = vadd.f32 1.0, %v388_v41 }
 0x156   :  { %389 = vrcp.f32 %v259_v42  ;;  %v271_v46 = vand.u32 2147483648, %v259_v42  ;;  %v269_v48 = vand.u32 2147483647, %v259_v42  ;;  %vm265_vm5 = vweird.f32 %v259_v42 }
 0x158   :  { %v272_v51 = vor.u32 1.1754944e-38, %v271_v46  ;;  %vm270_vm7 = vcmp.eq.f32.partialorder %v269_v48, 8.507059e+37 }
 0x15c   :  { %v390_v43 = vpop.eup %389 }
 0x15d   :  { %v261_v44 = vmul.f32 %v390_v43, %v259_v42  ;;  %vm266_vm4 = vweird.f32 %v390_v43 }
 0x15e   :  { %vm267_vm6 = vmor %vm265_vm5, %vm266_vm4 }
 0x15f   :  { %v262_v45 = vsub.f32 1.0, %v261_v44 }
 0x161   :  { %v263_v47 = vmul.f32 %v390_v43, %v262_v45 }
 0x163   :  { %v264_v49 = vadd.f32 %v390_v43, %v263_v47 }
 0x165   :  { %v268_v52 = vsel %vm267_vm6, %v390_v43, %v264_v49 }
 0x166   :  { %v273_v53 = vsel %vm270_vm7, %v272_v51, %v268_v52 }
 0x167   :  { %v279_v54 = vmul.f32 %v382_v50, %v273_v53 }
 0x169   :  { %280 = vadd.xlane.f32.xlu0 %v279_v54 }
 0x1dc   :  { %v281_v56 = vpop.xlane.xlu0 %280 }
 0x1dd   :  { %v284_v57 = vadd.f32 %v283_v55, %v281_v56 }
 0x1df   :  { %286 = vst.msk [vmem:[%s543_s7] sm:$0xff] %vm285_vm8, %v284_v57 }
 0x1e0   :  { %291 = vsyncpa [#allocation4], 1 }
 0x1e1   :  { %292 = vsyncpa [#allocation6], 1 }

</bundles_post_ra>
